<compile_context>
chip_gen: v6e
topology: v6e:2x2x1
jax: 0.10.0
libtpu: 0.0.40
codegen_flags: <defaults>
</compile_context>

<pallas_src>
import jax
import jax.numpy as jnp
from jax import lax
from jax.experimental import pallas as pl
from jax.experimental.pallas import tpu as pltpu

EPS = 1e-5
_LANE = 128
_MIN_GRID_STEPS = 8   # keep both v7x TensorCores busy and the pipeline warm


def _round_up(x, m):
    return ((x + m - 1) // m) * m


# --------------------------------------------------------------------------- #
# Kernels: block = (1, C, t)  [sublanes = channels, lanes = spatial positions] #
# --------------------------------------------------------------------------- #

def _ln_biasfree_kernel(x_ref, w_ref, o_ref):
    # x_ref: (1, C, t), w_ref: (1, C, 1), o_ref: (1, C, t)
    xf = x_ref[...].astype(jnp.float32)
    mean = jnp.mean(xf, axis=1, keepdims=True)            # (1, 1, t)  cross-sublane
    xc = xf - mean
    var = jnp.mean(xc * xc, axis=1, keepdims=True)        # >= 0 by construction
    rstd = lax.rsqrt(var + EPS)                           # EUP, free slot
    w = w_ref[...].astype(jnp.float32)                    # (1, C, 1)
    # BiasFree: output is x (NOT centered) scaled by rstd * weight.
    o_ref[...] = (xf * (rstd * w)).astype(o_ref.dtype)


def _ln_withbias_kernel(x_ref, w_ref, b_ref, o_ref):
    xf = x_ref[...].astype(jnp.float32)
    mean = jnp.mean(xf, axis=1, keepdims=True)
    xc = xf - mean
    var = jnp.mean(xc * xc, axis=1, keepdims=True)
    rstd = lax.rsqrt(var + EPS)
    w = w_ref[...].astype(jnp.float32)
    b = b_ref[...].astype(jnp.float32)
    # Centered form (x - mu) * (rstd * w) + b: no cancellation for large means.
    o_ref[...] = (xc * (rstd * w) + b).astype(o_ref.dtype)


# --------------------------------------------------------------------------- #
# Tiling / wrapper                                                             #
# --------------------------------------------------------------------------- #

def _vmem_capacity_bytes():
    try:
        cap = getattr(pltpu.get_tpu_info(), "vmem_capacity_bytes", None)
        if cap:
            return int(cap)
    except Exception:
        pass
    return 64 << 20   # conservative default = v7x per-TC VMEM


def _pick_hw_tile(B, C, HW, dtype):
    """Spatial (lane) tile: multi-MiB, multiple of 128, grid-count aware."""
    if HW <= _LANE:
        return HW                                  # full-extent last dim (always legal)
    itemsize = jnp.dtype(dtype).itemsize
    # In-flight pipeline buffers: 2x input tile + 2x output tile.  Budget from
    # the actual VMEM capacity (128 MiB on v5e/v6e, 64 MiB per TC on v7x).
    buf_budget = min(_vmem_capacity_bytes() // 3, 40 << 20)
    tile_bytes = min(16 << 20, buf_budget // 4)    # multi-MiB tiles -> near HBM roofline
    t = (tile_bytes // (C * itemsize)) // _LANE * _LANE
    t = max(t, _LANE)
    t = min(t, _round_up(HW, _LANE))
    # Keep at least ~_MIN_GRID_STEPS grid steps (v7x: 2 TCs share the parallel grid).
    if B * pl.cdiv(HW, t) < _MIN_GRID_STEPS:
        tiles_needed = max(-(-_MIN_GRID_STEPS // B), 1)
        t = min(t, max(_round_up(-(-HW // tiles_needed), _LANE), _LANE))
    return t


def cdt_layernorm(x_bchw, weight, bias=None, *, hw_tile=None):
    """Equivalent of CDT_arch LayerNorm(dim, LayerNorm_type).forward on (B, C, H, W).

    bias=None  -> BiasFree_LayerNorm
    bias given -> WithBias_LayerNorm
    """
    B, C, H, W = x_bchw.shape
    assert weight.shape == (C,)
    if bias is not None:
        assert bias.shape == (C,)
    HW = H * W
    x3 = x_bchw.reshape(B, C, HW)          # contiguous view: no extra HBM pass

    t = hw_tile if hw_tile is not None else _pick_hw_tile(B, C, HW, x_bchw.dtype)
    grid = (B, pl.cdiv(HW, t))             # Pallas masks the ragged last block

    itemsize = jnp.dtype(x_bchw.dtype).itemsize
    tile_bytes = C * t * itemsize
    # 2x double-buffered input tile + 2x output tile + params + headroom,
    # clamped well under v7x's 64 MiB per-TC physical VMEM.
    vmem_limit = int(min(max(4 * tile_bytes + 8 * C * 4 + (4 << 20), 16 << 20), 48 << 20))

    # Advisory: memory-bound custom call (reads + writes B*C*HW, tiny flop count).
    cost = pl.CostEstimate(
        flops=10 * B * C * HW,
        transcendentals=B * HW,
        bytes_accessed=2 * B * C * HW * itemsize + 2 * C * 4,
    )

    x_spec = pl.BlockSpec((1, C, t), lambda bi, ji: (bi, 0, ji))
    p_spec = pl.BlockSpec((1, C, 1), lambda bi, ji: (0, 0, 0))   # resident params
    out_spec = pl.BlockSpec((1, C, t), lambda bi, ji: (bi, 0, ji))

    if bias is None:
        kernel = _ln_biasfree_kernel
        in_specs = [x_spec, p_spec]
        args = (x3, weight.reshape(1, C, 1))
    else:
        kernel = _ln_withbias_kernel
        in_specs = [x_spec, p_spec, p_spec]
        args = (x3, weight.reshape(1, C, 1), bias.reshape(1, C, 1))

    out = pl.pallas_call(
        kernel,
        out_shape=jax.ShapeDtypeStruct((B, C, HW), x_bchw.dtype),
        grid_spec=pltpu.PrefetchScalarGridSpec(
            num_scalar_prefetch=0,
            grid=grid,
            in_specs=in_specs,
            out_specs=out_spec,
        ),
        compiler_params=pltpu.CompilerParams(
            dimension_semantics=("parallel", "parallel"),
            vmem_limit_bytes=vmem_limit,
        ),
        cost_estimate=cost,
    )(*args)

    return out.reshape(B, C, H, W)


# --------------------------------------------------------------------------- #
# Pure-JAX reference + self-test                                               #
# --------------------------------------------------------------------------- #

def _reference(x_bchw, weight, bias=None):
    # to_3d / to_4d are pure layout changes; the op normalizes over channels at
    # every (b, h, w) position with population (unbiased=False) variance.
    xf = x_bchw.astype(jnp.float32)
    mu = jnp.mean(xf, axis=1, keepdims=True)
    var = jnp.mean((xf - mu) ** 2, axis=1, keepdims=True)
    w = weight.astype(jnp.float32)[None, :, None, None]
    if bias is None:
        y = xf / jnp.sqrt(var + EPS) * w
    else:
        y = (xf - mu) / jnp.sqrt(var + EPS) * w \
            + bias.astype(jnp.float32)[None, :, None, None]
    return y.astype(x_bchw.dtype)


if __name__ == "__main__":
    key = jax.random.PRNGKey(0)
    kx, kw, kb, km = jax.random.split(key, 4)

    # CDT-style small input: C = 48 channels normalized (the C < 128 case the
    # channel-axis kernel fixes), nonzero mean to exercise numerical robustness.
    B, C, H, W = 2, 48, 16, 16
    x = 2.0 + jax.random.normal(kx, (B, C, H, W), dtype=jnp.float32)
    weight = 1.0 + 0.05 * jax.random.normal(kw, (C,), dtype=jnp.float32)
    bias = 0.05 * jax.random.normal(kb, (C,), dtype=jnp.float32)

    # BiasFree variant
    out_bf = jax.block_until_ready(cdt_layernorm(x, weight))
    ref_bf = _reference(x, weight)
    assert out_bf.shape == x.shape
    assert jnp.allclose(out_bf, ref_bf, atol=1e-4, rtol=1e-4), "BiasFree mismatch"

    # WithBias variant
    out_wb = jax.block_until_ready(cdt_layernorm(x, weight, bias))
    ref_wb = _reference(x, weight, bias)
    assert jnp.allclose(out_wb, ref_wb, atol=1e-4, rtol=1e-4), "WithBias mismatch"

    # Ragged lane-tile path: HW = 16*12 = 192 with tile 128 -> masked last block.
    B2, C2, H2, W2 = 2, 32, 16, 12
    x2 = jax.random.normal(km, (B2, C2, H2, W2), dtype=jnp.float32)
    out_rg = jax.block_until_ready(cdt_layernorm(x2, weight[:C2], bias[:C2], hw_tile=128))
    ref_rg = _reference(x2, weight[:C2], bias[:C2])
    assert jnp.allclose(out_rg, ref_rg, atol=1e-4, rtol=1e-4), "ragged-tile mismatch"

    print("KERNEL_OK")
</pallas_src>

<mosaic_0001>
module attributes {stable_mosaic.version = 11 : i64} {
  func.func @_ln_biasfree_kernel(%arg0: i32, %arg1: i32, %arg2: memref<1x48x128xf32, #tpu.memory_space<vmem>>, %arg3: memref<1x48x1xf32, #tpu.memory_space<vmem>>, %arg4: memref<1x48x128xf32, #tpu.memory_space<vmem>>) attributes {dimension_semantics = [#tpu.dimension_semantics<parallel>, #tpu.dimension_semantics<parallel>], iteration_bounds = array<i64: 2, 2>, scalar_prefetch = 0 : i64, scratch_operands = 0 : i64, tpu.core_type = #tpu.core_type<tc>, window_params = [{transform_indices = @transform_0, window_bounds = array<i64: 1, 48, 128>}, {pipeline_mode = #tpu.pipeline_mode<synchronous>, transform_indices = @transform_1, window_bounds = array<i64: 1, 48, 1>}, {transform_indices = @transform_2, window_bounds = array<i64: 1, 48, 128>}]} {
    %c0 = arith.constant 0 : index
    %c0_0 = arith.constant 0 : index
    %c0_1 = arith.constant 0 : index
    %0 = vector.load %arg2[%c0, %c0_0, %c0_1] : memref<1x48x128xf32, #tpu.memory_space<vmem>>, vector<1x48x128xf32>
    %cst = arith.constant dense<0.000000e+00> : vector<1x128xf32>
    %1 = vector.multi_reduction <add>, %0, %cst [1] : vector<1x48x128xf32> to vector<1x128xf32>
    %2 = vector.shape_cast %1 : vector<1x128xf32> to vector<1x1x128xf32>
    %cst_2 = arith.constant 4.800000e+01 : f32
    %3 = vector.broadcast %cst_2 : f32 to vector<1x1x128xf32>
    %4 = arith.divf %2, %3 : vector<1x1x128xf32>
    %5 = vector.broadcast %4 : vector<1x1x128xf32> to vector<1x48x128xf32>
    %6 = arith.subf %0, %5 : vector<1x48x128xf32>
    %7 = arith.mulf %6, %6 : vector<1x48x128xf32>
    %cst_3 = arith.constant dense<0.000000e+00> : vector<1x128xf32>
    %8 = vector.multi_reduction <add>, %7, %cst_3 [1] : vector<1x48x128xf32> to vector<1x128xf32>
    %9 = vector.shape_cast %8 : vector<1x128xf32> to vector<1x1x128xf32>
    %cst_4 = arith.constant 4.800000e+01 : f32
    %10 = vector.broadcast %cst_4 : f32 to vector<1x1x128xf32>
    %11 = arith.divf %9, %10 : vector<1x1x128xf32>
    %cst_5 = arith.constant 9.99999974E-6 : f32
    %12 = vector.broadcast %cst_5 : f32 to vector<1x1x128xf32>
    %13 = arith.addf %11, %12 : vector<1x1x128xf32>
    %14 = math.rsqrt %13 : vector<1x1x128xf32>
    %c0_6 = arith.constant 0 : index
    %c0_7 = arith.constant 0 : index
    %c0_8 = arith.constant 0 : index
    %15 = vector.load %arg3[%c0_6, %c0_7, %c0_8] : memref<1x48x1xf32, #tpu.memory_space<vmem>>, vector<1x48x1xf32>
    %16 = vector.broadcast %14 : vector<1x1x128xf32> to vector<1x48x128xf32>
    %17 = vector.broadcast %15 : vector<1x48x1xf32> to vector<1x48x128xf32>
    %18 = arith.mulf %16, %17 : vector<1x48x128xf32>
    %19 = arith.mulf %0, %18 : vector<1x48x128xf32>
    %c0_9 = arith.constant 0 : index
    %c0_10 = arith.constant 0 : index
    %c0_11 = arith.constant 0 : index
    %20 = vector.load %arg4[%c0_9, %c0_10, %c0_11] : memref<1x48x128xf32, #tpu.memory_space<vmem>>, vector<1x48x128xf32>
    tpu.vector_store %arg4[%c0_9, %c0_10, %c0_11], %19 {strides = array<i32>} : memref<1x48x128xf32, #tpu.memory_space<vmem>>, vector<1x48x128xf32>,
    return
  }
  func.func @transform_0(%arg0: i32, %arg1: i32) -> (i32, i32, i32) {
    %c0_i32 = arith.constant 0 : i32
    %c0_i32_0 = arith.constant 0 : i32
    return %arg0, %c0_i32, %arg1 : i32, i32, i32
  }
  func.func @transform_1(%arg0: i32, %arg1: i32) -> (i32, i32, i32) {
    %c0_i32 = arith.constant 0 : i32
    %c0_i32_0 = arith.constant 0 : i32
    %c0_i32_1 = arith.constant 0 : i32
    %c0_i32_2 = arith.constant 0 : i32
    return %c0_i32, %c0_i32_0, %c0_i32_1 : i32, i32, i32
  }
  func.func @transform_2(%arg0: i32, %arg1: i32) -> (i32, i32, i32) {
    %c0_i32 = arith.constant 0 : i32
    %c0_i32_0 = arith.constant 0 : i32
    return %arg0, %c0_i32, %arg1 : i32, i32, i32
  }
}

</mosaic_0001>

<bundles_post_ra>
// kernel: tpu_custom_call.1
= control target key start
LH: loop header
LB: loop body
LE: loop exit
PB: predicated region body
PF: predicated region fallthrough
CT: control target
= control target key end

     0   :  { %7 = vsyncpa [#allocation3], 0  ;;  %s836_s0 = inlined_call_operand.hbm [shape: f32[2,48,256], index: 0, kind: input, shape index: {}]   ;;  %s837_s1 = inlined_call_operand.vmem [shape: f32[1,48,1], index: 1, kind: input, shape index: {}]   ;;  %s838_s2 = inlined_call_operand.hbm [shape: f32[2,48,256], index: 2, kind: output, shape index: {}]  }
   0x1   :  { %9 = vsyncpa [#allocation3 + $0x1], 0 }
   0x2   :  { %10 = vsyncpa [#allocation4], 0 }
   0x3   :  { %12 = vsyncpa [#allocation4 + $0x1], 0  ;;  %s633_s9 = smov 0   ;;  %s635_s10 = smov 0  }
   0x4   :  { %s637_s11 = smov 0   ;;  %s639_s12 = smov 0  }
   0x5   :  { %s641_s13 = smov 0   ;;  %s643_s14 = smov 0  }
   0x6   :  { %s645_s15 = smov 0   ;;  %s647_s16 = smov 0  }
   0x7 LB: > { %s381_s17 = sadd.s32 4294967295, %s607_s16   ;;  %s382_s18 = sadd.s32 4294967294, %s607_s16   ;;  %s607_s16 = sphi %s647_s16, %s18_s16   ;;  %s603_s15 = sphi %s645_s15, %s856_s15   ;;  %s599_s14 = sphi %s643_s14, %s855_s14   ;;  %s595_s13 = sphi %s641_s13, %s854_s13   ;;  %s591_s12 = sphi %s639_s12, %s853_s12   ;;  %s587_s11 = sphi %s637_s11, %s852_s11   ;;  %s583_s10 = sphi %s635_s10, %s851_s10   ;;  %s579_s9 = sphi %s633_s9, %s850_s9  }
   0x8   : > { %s27_s19 = sadd.s32 1, %s599_s14  ;;  %s30_s20 = sadd.s32 1, %s603_s15 }
   0x9   : > { %p28_p0 = scmp.ge.s32.totalorder %s27_s19, 2  ;;  %s39_s21 = sadd.s32 1, %s587_s11 }
   0xa   : > { %p46_p1 = scmp.ne.s32.totalorder %s587_s11, %s583_s10  ;;  %p47_p2 = scmp.eq.s32.totalorder %s607_s16, 0 }
   0xb   : > { %s858_s19 = smov (%p28_p0, %s27_s19), 0  ;;  %s860_s20 = smov (!%p28_p0, %s30_s20), %s603_s15 }
   0xc   : > { %841 = sst [smem:[#allocation8_spill]] %s858_s19  ;;  %s35_s22 = ssub.s32 %s599_s14, %s858_s19 }
   0xd   : > { %p686_p3 = por %p47_p2, %p46_p1  ;;  %p32_p4 = scmp.ge.s32.totalorder %s860_s20, 2 }
   0xe   : > { %p52_p5 = scmp.ne.s32.totalorder %s583_s10, %s579_s9  ;;  %p53_p6 = scmp.eq.s32.totalorder %s381_s17, 0 }
   0xf   : > { %p99_p7 = scmp.eq.s32.totalorder %s381_s17, 3  ;;  %s862_s20 = smov (%p32_p4, %s860_s20), 0 }
  0x10   : > { %843 = sst [smem:[#allocation9_spill]] %s862_s20  ;;  %p694_p8 = por %p53_p6, %p52_p5 }
  0x11   : > { %p698_p9 = por %p99_p7, %p46_p1  ;;  %s34_s26 = ssub.s32 %s603_s15, %s862_s20 }
  0x12   : > { %p105_p10 = scmp.eq.s32.totalorder %s382_s18, 3  ;;  %s36_s27 = sor.u32 %s35_s22, %s34_s26 }
  0x13   : > { %p37_p11 = scmp.eq.s32.totalorder %s36_s27, 0  ;;  %p406_p13 = scmp.lt.s32.totalorder %s607_s16, 4 }
  0x14   : > { %p704_p12 = por %p105_p10, %p52_p5  ;;  %s128_s29 = sand.u32 1, %s587_s11  }
  0x15   : > { %s711_s30 = scalar_select %p37_p11, %s587_s11, %s39_s21  }
  0x16   : > { %s390_s3 = smul.u32 48, %s128_s29  ;;  %p716_p0 = pnand %p406_p13, %p686_p3 }
  0x17   : > { %s391_s4 = smul.u32 12, %s603_s15  ;;  %s129_s27 = scalar_lea.sflag [#allocation3], %s128_s29 }
  0x18   : > { %s132_s7 = scalar_lea.vmem [#allocation2], %s390_s3  ;;  %p485_p1 = pneg %p716_p0 }
  0x19   : > { %s137_s6 = sadd.s32 %s599_s14, %s391_s4  ;;  %s140_s8 = sshll.u32 %s132_s7, 4  ;;  %s141_s8 = int_to_ptr.vmem [resolvable:$true] %s140_s8 }
  0x1a   : > { %s385_s17 = sshll.u32 %s137_s6, 7  ;;  %s496_s21 = scalar_lea.vmem %s141_s8, 768 }
  0x1b   : > { %s139_s26 = scalar_lea.hbm %s836_s0, %s385_s17  ;;  %p497_p2 = scmp.ne.s32.totalorder %s141_s8, %s496_s21 }
  0x1c   : > { %s609_s23 = smov [#allocation2]  }
  0x1d   : > { %p499_p4 = pnand %p497_p2, %p485_p1  ;;  %s501_s20 = sshll.u32 %s609_s23, 4  ;;  %s502_s20 = int_to_ptr.vmem [resolvable:$false] %s501_s20 }
  0x1e   : > { %s503_s19 = scalar_lea.vmem %s502_s20, 1536  ;;  %p504_p5 = scmp.lt.s32.totalorder %s141_s8, %s502_s20 }
  0x1f   : > { %p500_p3 = pneg %p499_p4  ;;  %p505_p6 = scmp.lt.s32.totalorder %s503_s19, %s496_s21 }
  0x21   : > { %p506_p7 = por %p505_p6, %p504_p5 }
  0x23   : > { %p507_p10 = pnand %p506_p7, %p500_p3 }
  0x25   : > { %510 = shalt.err (!%p507_p10)
}
  0x26   : > { %s610_s3 = smov 256   ;;  %s611_s29 = smov 128  }
  0x27   : > { %s612_s4 = smov 8   ;;  %p386_p11 = scmp.ge.s32.totalorder %s607_s16, 1 }
  0x28   : > { %401 = dma.hbm_to_vmem [thread:$0]  (!%p716_p0), %s139_s26, 768, %s141_s8, %s129_s27, %s610_s3, %s611_s29, %s612_s4  }
  0x29   : > { %p148_p13 = scmp.lt.s32.totalorder %s607_s16, 5 }
  0x2b   : > { %p149_p1 = pnand %p386_p11, %p148_p13 }
  0x2c   : > { %s731_s6 = sand.u32 (!%p149_p1), 1, %s583_s10  }
  0x2d   : > { %152 = sbr.rel (%p149_p1) target bundleno = 204 (0xcc), region = 28  ;;  %s155_s20 = scalar_lea.sflag (!%p149_p1), [#allocation3], %s731_s6 }
  0x2e   : > { %s392_s19 = smul.u32 (!%p149_p1), 48, %s731_s6 }
  0x30   : > { %s158_s7 = scalar_lea.vmem (!%p149_p1), [#allocation2], %s392_s19 }
  0x32   : > { %570 = dma.done.wait (%p694_p8), %s155_s20, 768  }
  0x33   : > { %572 = vsyncadd (%p694_p8), %s155_s20, 4294966528  ;;  %v613_v0 = vmov 0   ;;  %v226_v1 = vld [vmem:[%s837_s1 + $0x10] sm:$0xff]  ;;  %v224_v2 = vld [vmem:[%s837_s1] sm:$0xff]  ;;  %s393_s4 = smul.u32 12, %s595_s13  ;;  %s279_s17 = scalar_lea.sflag [#allocation4], %s731_s6 }
  0x34   : > { %480 = vset.pattern.permute.xlu1 %v613_v0  ;;  %479 = vset.pattern.permute.xlu0 %v613_v0  ;;  %v227_v3 = vld [vmem:[%s837_s1 + $0x18] sm:$0xff]  ;;  %v225_v4 = vld [vmem:[%s837_s1 + $0x8] sm:$0xff]  ;;  %v179_v5 = vld [vmem:[%s158_s7] sm:$0xff]  ;;  %s614_s22 = smov [#allocation5]  }
  0x35   : > { %242 = vperm.xlu1 %480, %v226_v1   ;;  %232 = vperm.xlu0 %479, %v224_v2   ;;  %v753_v6 = vld [vmem:[%s158_s7 + $0x8] sm:$0xff]  ;;  %v181_v7 = vld [vmem:[%s158_s7 + $0x10] sm:$0xff]  ;;  %v182_v12 = vld [vmem:[%s158_s7 + $0x18] sm:$0xff]  ;;  %s290_s20 = sadd.s32 %s591_s12, %s393_s4  ;;  %s515_s26 = sshll.u32 %s614_s22, 4  ;;  %s516_s26 = int_to_ptr.vmem [resolvable:$false] %s515_s26 }
  0x36   : > { %v185_v8 = vadd.f32 %v753_v6, %v179_v5  ;;  %v229_v10 = vld [vmem:[%s837_s1 + $0x28] sm:$0xff]  ;;  %v228_v11 = vld [vmem:[%s837_s1 + $0x20] sm:$0xff]  ;;  %s387_s8 = sshll.u32 %s290_s20, 7  ;;  %s517_s27 = scalar_lea.vmem %s516_s26, 1536 }
  0x37   : > { %v762_v14 = vld [vmem:[%s158_s7 + $0x20] sm:$0xff]  ;;  %v765_v16 = vld [vmem:[%s158_s7 + $0x28] sm:$0xff]  ;;  %s178_s7 = scalar_lea.vmem [#allocation5], %s392_s19  ;;  %s781_s19 = scalar_lea.hbm %s838_s2, %s387_s8 }
  0x38   : > { %v186_v9 = vadd.f32 %v185_v8, %v181_v7  ;;  %s293_s5 = sshll.u32 %s178_s7, 4  ;;  %s776_s5 = int_to_ptr.vmem [resolvable:$true] %s293_s5 }
  0x39   : > { %247 = vperm.xlu1 %480, %v227_v3   ;;  %237 = vperm.xlu0 %479, %v225_v4   ;;  %s511_s18 = scalar_lea.vmem %s776_s5, 768  ;;  %p518_p4 = scmp.lt.s32.totalorder %s776_s5, %s516_s26 }
  0x3a   : > { %v187_v13 = vadd.f32 %v186_v9, %v182_v12  ;;  %p512_p8 = scmp.ne.s32.totalorder %s776_s5, %s511_s18  ;;  %p519_p3 = scmp.lt.s32.totalorder %s517_s27, %s511_s18 }
  0x3c   : > { %v188_v15 = vadd.f32 %v187_v13, %v762_v14  ;;  %p513_p0 = pnand %p512_p8, %p698_p9  ;;  %p520_p5 = por %p519_p3, %p518_p4 }
  0x3d   : > { %257 = vperm.xlu1 %480, %v229_v10   ;;  %252 = vperm.xlu0 %479, %v228_v11  }
  0x3e   : > { %v189_v17 = vadd.f32 %v188_v15, %v765_v16  ;;  %p514_p2 = pneg %p513_p0 }
  0x40   : > { %v190_v18 = vrot.slane %v189_v17, 4  ;;  %p521_p6 = pnand %p520_p5, %p514_p2 }
  0x42   : > { %v191_v19 = vadd.f32 %v190_v18, %v189_v17 }
  0x44   : > { %v192_v20 = vrot.slane %v191_v19, 2 }
  0x46   : > { %v193_v21 = vadd.f32 %v192_v20, %v191_v19 }
  0x48   : > { %v194_v22 = vrot.slane %v193_v21, 1 }
  0x4a   : > { %v195_v23 = vadd.f32 %v194_v22, %v193_v21 }
  0x4c   : > { %v197_v24 = vmul.f32 0.020833334, %v195_v23 }
  0x4e   : > { %v198_v25 = vsub.f32 %v179_v5, %v197_v24  ;;  %v199_v26 = vsub.f32 %v753_v6, %v197_v24  ;;  %v200_v27 = vsub.f32 %v181_v7, %v197_v24  ;;  %v201_v30 = vsub.f32 %v182_v12, %v197_v24 }
  0x4f   : > { %v202_v33 = vsub.f32 %v762_v14, %v197_v24  ;;  %v203_v36 = vsub.f32 %v765_v16, %v197_v24 }
  0x50   : > { %v204_v28 = vmul.f32 %v198_v25, %v198_v25  ;;  %v205_v29 = vmul.f32 %v199_v26, %v199_v26  ;;  %v206_v31 = vmul.f32 %v200_v27, %v200_v27  ;;  %v207_v34 = vmul.f32 %v201_v30, %v201_v30 }
  0x51   : > { %v208_v37 = vmul.f32 %v202_v33, %v202_v33  ;;  %v209_v39 = vmul.f32 %v203_v36, %v203_v36 }
  0x52   : > { %v210_v32 = vadd.f32 %v205_v29, %v204_v28 }
  0x54   : > { %v211_v35 = vadd.f32 %v210_v32, %v206_v31 }
  0x56   : > { %v212_v38 = vadd.f32 %v211_v35, %v207_v34 }
  0x58   : > { %v213_v40 = vadd.f32 %v212_v38, %v208_v37 }
  0x5a   : > { %v214_v41 = vadd.f32 %v213_v40, %v209_v39 }
  0x5c   : > { %v215_v42 = vrot.slane %v214_v41, 4 }
  0x5e   : > { %v216_v43 = vadd.f32 %v215_v42, %v214_v41 }
  0x60   : > { %v217_v44 = vrot.slane %v216_v43, 2 }
  0x62   : > { %v218_v45 = vadd.f32 %v217_v44, %v216_v43 }
  0x64   : > { %v219_v46 = vrot.slane %v218_v45, 1 }
  0x66   : > { %v220_v47 = vadd.f32 %v219_v46, %v218_v45 }
  0x68   : > { %v221_v48 = vmul.f32 0.020833334, %v220_v47 }
  0x6a   : > { %v222_v49 = vadd.f32 1e-05, %v221_v48 }
  0x6c   : > { %481 = vrsqrt.f32 %v222_v49 }
  0x79   : > { %v482_v50 = vpop.eup %481 }
  0xb0   : > { %v243_v51 = vpop.permute.xlu1 %242  ;;  %v233_v52 = vpop.permute.xlu0 %232 }
  0xb1   : > { %v262_v53 = vmul.f32 %v482_v50, %v243_v51  ;;  %v260_v54 = vmul.f32 %v482_v50, %v233_v52 }
  0xb3   : > { %v268_v55 = vmul.f32 %v262_v53, %v181_v7  ;;  %v266_v56 = vmul.f32 %v260_v54, %v179_v5 }
  0xb4   : > { %v248_v57 = vpop.permute.xlu1 %247  ;;  %v238_v58 = vpop.permute.xlu0 %237 }
  0xb5   : > { %274 = vst [vmem:[%s178_s7 + $0x10] sm:$0xff] %v268_v55  ;;  %272 = vst [vmem:[%s178_s7] sm:$0xff] %v266_v56  ;;  %v263_v59 = vmul.f32 %v482_v50, %v248_v57  ;;  %v261_v60 = vmul.f32 %v482_v50, %v238_v58 }
  0xb7   : > { %v269_v61 = vmul.f32 %v263_v59, %v182_v12  ;;  %v267_v62 = vmul.f32 %v261_v60, %v753_v6 }
  0xb8   : > { %v258_v63 = vpop.permute.xlu1 %257  ;;  %v253_v0 = vpop.permute.xlu0 %252 }
  0xb9   : > { %275 = vst [vmem:[%s178_s7 + $0x18] sm:$0xff] %v269_v61  ;;  %273 = vst [vmem:[%s178_s7 + $0x8] sm:$0xff] %v267_v62  ;;  %v265_v1 = vmul.f32 %v482_v50, %v258_v63  ;;  %v264_v2 = vmul.f32 %v482_v50, %v253_v0 }
  0xbb   : > { %v271_v3 = vmul.f32 %v265_v1, %v765_v16  ;;  %v270_v4 = vmul.f32 %v264_v2, %v762_v14 }
  0xbd   : > { %277 = vst [vmem:[%s178_s7 + $0x28] sm:$0xff] %v271_v3  ;;  %276 = vst [vmem:[%s178_s7 + $0x20] sm:$0xff] %v270_v4 }
  0xbe   : > { %524 = shalt.err (!%p521_p6)
}
  0xbf   : > { %s525_s24 = scalar_lea.hbm %s781_s19, 768  ;;  %s529_s3 = scalar_lea.hbm %s838_s2, 3072 }
  0xc0   : > { %p526_p7 = scmp.ne.s32.totalorder %s781_s19, %s525_s24  ;;  %p530_p13 = scmp.lt.s32.totalorder %s781_s19, %s838_s2 }
  0xc1   : > { %p531_p1 = scmp.lt.s32.totalorder %s529_s3, %s525_s24 }
  0xc2   : > { %p527_p10 = pnand %p526_p7, %p698_p9 }
  0xc3   : > { %p532_p8 = por %p531_p1, %p530_p13 }
  0xc4   : > { %p528_p11 = pneg %p527_p10 }
  0xc6   : > { %p533_p0 = pnand %p532_p8, %p528_p11 }
  0xc8   : > { %536 = shalt.err (!%p533_p0)
}
  0xc9   : > { %s615_s20 = smov 128   ;;  %s616_s7 = smov 256  }
  0xca   : > { %s617_s8 = smov 8  }
  0xcb   : > { %396 = dma.vmem_to_hbm [thread:$0]  (%p698_p9), %s776_s5, 768, %s781_s19, %s279_s17, %s615_s20, %s616_s7, %s617_s8  }
  0xcc PF: > { %p407_p2 = scmp.ge.s32.totalorder %s607_s16, 2  ;;  %s308_s12 = sand.u32 1, %s579_s9  }
  0xcd   : > { %s309_s13 = scalar_lea.sflag [#allocation4], %s308_s12 }
  0xce   : > { %p403_p4 = pnand %p407_p2, %p704_p12 }
  0xd0   : > { %p404_p3 = pneg %p403_p4 }
  0xd2   : > { %574 = dma.done.wait (%p404_p3), %s309_s13, 768  }
  0xd3   : > { %576 = vsyncadd (%p404_p3), %s309_s13, 4294966528  ;;  %s18_s16 = sadd.s32 1, %s607_s16   ;;  %s848_s25 = sld [smem:[#allocation8_spill]] }
  0xd4   : > { %p15_p5 = scmp.ge.s32.totalorder %s18_s16, 6   ;;  %s849_s6 = sld [smem:[#allocation9_spill]] }
  0xd5   : > { %s850_s9 = smov %s583_s10  ;;  %s851_s10 = smov %s587_s11 }
  0xd6   : > { %s852_s11 = smov %s711_s30  ;;  %s853_s12 = smov %s599_s14 }
  0xd7   : > { %s854_s13 = smov %s603_s15  ;;  %17 = sbr.rel (!%p15_p5) target bundleno = 7 (0x7), region = 73 }
  0xd9   : > { %s855_s14 = smov %s848_s25 }
  0xda   : > { %s856_s15 = smov %s849_s6 }
  0xdc   :  { %314 = vsyncpa [#allocation3], 1 }
  0xdd   :  { %316 = vsyncpa [#allocation3 + $0x1], 1 }
  0xde   :  { %317 = vsyncpa [#allocation4], 1 }
  0xdf   :  { %319 = vsyncpa [#allocation4 + $0x1], 1 }

</bundles_post_ra>
